<compile_context>
chip_gen: v7x
topology: tpu7x:2x2x1
jax: 0.10.0
libtpu: 0.0.40
codegen_flags: <defaults>
</compile_context>

<pallas_src>
import functools

import jax
import jax.numpy as jnp
from jax.experimental import pallas as pl
from jax.experimental.pallas import tpu as pltpu

LANE = 128
SUBLANE = 8


def _cdiv(a, b):
    return (a + b - 1) // b


def _round_up(n, m):
    return ((n + m - 1) // m) * m


def policy_net_kernel(x_ref, w1_ref, b1_ref, w2_ref, b2_ref, out_ref):
    # Cast the activation tile to the weights' MXU dtype in VMEM (no extra HBM pass).
    x = x_ref[...].astype(w1_ref.dtype)

    # fc1 + ReLU: MXU matmul with f32 accumulation; bias/ReLU in f32.
    h = jnp.dot(x, w1_ref[...], preferred_element_type=jnp.float32) + b1_ref[...]
    h = jnp.maximum(h, 0.0)

    # fc2 logits (zero-padded hidden columns contract against zero W2 rows -> exact).
    logits = jnp.dot(h.astype(w2_ref.dtype), w2_ref[...],
                     preferred_element_type=jnp.float32) + b2_ref[...]

    # Numerically stable softmax over the action (last) axis.  Exact divide so rows
    # sum to 1 to f32 rounding (PPO log-prob ratios / sampling need exact normalization).
    m = jnp.max(logits, axis=-1, keepdims=True)
    e = jnp.exp(logits - m)
    denom = jnp.sum(e, axis=-1, keepdims=True)
    out_ref[...] = (e / denom).astype(out_ref.dtype)


def prepare_params(w1, b1, w2, b2, mxu_dtype=jnp.bfloat16):
    """One-time parameter prep -- hoist this out of the rollout/inference loop.

    Pads hidden_dim to a lane multiple (zero padding is exact through ReLU and fc2)
    and casts the weight matrices to the MXU dtype (configurable; pass jnp.float32
    to keep full-precision numerics).  Biases stay f32.
    Layout: w1 [S, H] (x @ w1), w2 [H, A] (h @ w2) -- transposed vs torch.nn.Linear.
    """
    S, H = w1.shape
    A = w2.shape[1]
    Hp = _round_up(H, LANE)
    w1p = jnp.zeros((S, Hp), jnp.float32).at[:, :H].set(w1).astype(mxu_dtype)
    b1p = jnp.zeros((1, Hp), jnp.float32).at[:, :H].set(b1.reshape(1, H))
    w2p = jnp.zeros((Hp, A), jnp.float32).at[:H, :].set(w2).astype(mxu_dtype)
    b2p = b2.reshape(1, A).astype(jnp.float32)
    return w1p, b1p, w2p, b2p


def _choose_batch_tile(B, block_b):
    """Batch tile: multiple of the 8-row sublane, <= block_b, >= 2 grid steps when possible."""
    if B <= SUBLANE:
        return B  # tiny batch: one block equal to the full dim (legal BlockSpec)
    two_way = _round_up(_cdiv(B, 2), SUBLANE)   # aim for >= 2 tiles (v7x: 2 TensorCores)
    return max(SUBLANE, min(block_b, two_way))


@functools.partial(jax.jit, static_argnames=("block_b",))
def policy_net_forward(x, w1p, b1p, w2p, b2p, *, block_b=256):
    """x: [B, state_dim] f32; params from prepare_params().  Returns probs [B, A] f32.

    block_b tuning: 128-256 on v5e (vreg/16 MiB scoped-VMEM pressure), up to ~1024 on
    v6e (128 MiB VMEM), moderate on v7x (64 MiB VMEM, 2 TCs want >= 2 tiles).
    """
    B, S = x.shape
    Hp = w1p.shape[1]
    A = w2p.shape[1]

    tb = _choose_batch_tile(B, block_b)
    grid = (_cdiv(B, tb),)

    nbytes = lambda a: a.size * a.dtype.itemsize
    cost = pl.CostEstimate(
        flops=2 * B * (S * Hp + Hp * A),
        transcendentals=B * A,
        bytes_accessed=(nbytes(x) + nbytes(w1p) + nbytes(b1p)
                        + nbytes(w2p) + nbytes(b2p) + B * A * 4),
    )

    return pl.pallas_call(
        policy_net_kernel,
        out_shape=jax.ShapeDtypeStruct((B, A), jnp.float32),
        grid_spec=pltpu.PrefetchScalarGridSpec(
            num_scalar_prefetch=0,
            grid=grid,
            in_specs=[
                pl.BlockSpec((tb, S), lambda i: (i, 0)),    # x: batch-tiled, f32 from HBM
                pl.BlockSpec((S, Hp), lambda i: (0, 0)),    # W1: VMEM-resident
                pl.BlockSpec((1, Hp), lambda i: (0, 0)),    # b1: resident
                pl.BlockSpec((Hp, A), lambda i: (0, 0)),    # W2: resident
                pl.BlockSpec((1, A), lambda i: (0, 0)),     # b2: resident
            ],
            out_specs=pl.BlockSpec((tb, A), lambda i: (i, 0)),  # narrow output, no slice
        ),
        compiler_params=pltpu.CompilerParams(
            dimension_semantics=("parallel",),  # shard batch tiles across TCs (v7x)
        ),
        cost_estimate=cost,
    )(x, w1p, b1p, w2p, b2p)


def init_params(key, state_dim, hidden_dim, action_dim):
    """Deterministic PyTorch-style init: U(-1/sqrt(fan_in), 1/sqrt(fan_in))."""
    k1, k2, k3, k4 = jax.random.split(key, 4)
    bound1 = 1.0 / jnp.sqrt(state_dim)
    bound2 = 1.0 / jnp.sqrt(hidden_dim)
    w1 = jax.random.uniform(k1, (state_dim, hidden_dim), jnp.float32, -bound1, bound1)
    b1 = jax.random.uniform(k2, (1, hidden_dim), jnp.float32, -bound1, bound1)
    w2 = jax.random.uniform(k3, (hidden_dim, action_dim), jnp.float32, -bound2, bound2)
    b2 = jax.random.uniform(k4, (1, action_dim), jnp.float32, -bound2, bound2)
    return w1, b1, w2, b2


def _reference(x, w1, b1, w2, b2):
    h = jnp.maximum(x @ w1 + b1, 0.0)
    return jax.nn.softmax(h @ w2 + b2, axis=1)


if __name__ == "__main__":
    batch, state_dim, hidden_dim, action_dim = 2, 4, 32, 4

    key = jax.random.PRNGKey(0)
    kx, kp, kb = jax.random.split(key, 3)
    x = jax.random.normal(kx, (batch, state_dim), jnp.float32)
    w1, b1, w2, b2 = init_params(kp, state_dim, hidden_dim, action_dim)

    # One-time weight prep (hoisted out of the per-step path).
    params = prepare_params(w1, b1, w2, b2)

    probs = jax.block_until_ready(policy_net_forward(x, *params))
    probs_ref = _reference(x, w1, b1, w2, b2)
    assert probs.shape == (batch, action_dim)
    # bf16 MXU weights -> relaxed tolerance vs the f32 reference.
    assert jnp.allclose(probs, probs_ref, atol=2e-2, rtol=2e-2)
    # Exact divide: rows sum to 1 up to f32 rounding.
    assert jnp.allclose(jnp.sum(probs, axis=1), 1.0, atol=1e-4)

    # Multi-tile / ragged-batch path: grid > 1 and a partially out-of-bounds last block.
    xb = jax.random.normal(kb, (300, state_dim), jnp.float32)
    probs_b = jax.block_until_ready(policy_net_forward(xb, *params, block_b=128))
    probs_b_ref = _reference(xb, w1, b1, w2, b2)
    assert probs_b.shape == (300, action_dim)
    assert jnp.allclose(probs_b, probs_b_ref, atol=2e-2, rtol=2e-2)
    assert jnp.allclose(jnp.sum(probs_b, axis=1), 1.0, atol=1e-4)

    print("KERNEL_OK")
</pallas_src>

<mosaic_0001>
module attributes {stable_mosaic.version = 11 : i64} {
  func.func @policy_net_kernel(%arg0: i32, %arg1: memref<2x4xf32, #tpu.memory_space<vmem>>, %arg2: memref<4x128xbf16, #tpu.memory_space<vmem>>, %arg3: memref<1x128xf32, #tpu.memory_space<vmem>>, %arg4: memref<128x4xbf16, #tpu.memory_space<vmem>>, %arg5: memref<1x4xf32, #tpu.memory_space<vmem>>, %arg6: memref<2x4xf32, #tpu.memory_space<vmem>>) attributes {dimension_semantics = [#tpu.dimension_semantics<parallel>], iteration_bounds = array<i64: 1>, scalar_prefetch = 0 : i64, scratch_operands = 0 : i64, tpu.core_type = #tpu.core_type<tc>, window_params = [{transform_indices = @transform_0, window_bounds = array<i64: 2, 4>}, {pipeline_mode = #tpu.pipeline_mode<synchronous>, transform_indices = @transform_1, window_bounds = array<i64: 4, 128>}, {pipeline_mode = #tpu.pipeline_mode<synchronous>, transform_indices = @transform_2, window_bounds = array<i64: 1, 128>}, {pipeline_mode = #tpu.pipeline_mode<synchronous>, transform_indices = @transform_3, window_bounds = array<i64: 128, 4>}, {pipeline_mode = #tpu.pipeline_mode<synchronous>, transform_indices = @transform_4, window_bounds = array<i64: 1, 4>}, {transform_indices = @transform_5, window_bounds = array<i64: 2, 4>}]} {
    %c0 = arith.constant 0 : index
    %c0_0 = arith.constant 0 : index
    %0 = vector.load %arg1[%c0, %c0_0] : memref<2x4xf32, #tpu.memory_space<vmem>>, vector<2x4xf32>
    %1 = arith.truncf %0 : vector<2x4xf32> to vector<2x4xbf16>
    %c0_1 = arith.constant 0 : index
    %c0_2 = arith.constant 0 : index
    %2 = vector.load %arg2[%c0_1, %c0_2] : memref<4x128xbf16, #tpu.memory_space<vmem>>, vector<4x128xbf16>
    %cst = arith.constant dense<0.000000e+00> : vector<2x128xf32>
    %3 = tpu.matmul %1, %2, %cst {dimension_numbers = #tpu.dot_dimension_numbers<[1], [0], [0], [1], [0, 0, 1, 1], [], []>} : vector<2x4xbf16>, vector<4x128xbf16>, vector<2x128xf32> -> vector<2x128xf32>
    %c0_3 = arith.constant 0 : index
    %c0_4 = arith.constant 0 : index
    %4 = vector.load %arg3[%c0_3, %c0_4] : memref<1x128xf32, #tpu.memory_space<vmem>>, vector<1x128xf32>
    %5 = vector.broadcast %4 : vector<1x128xf32> to vector<2x128xf32>
    %6 = arith.addf %3, %5 : vector<2x128xf32>
    %cst_5 = arith.constant 0.000000e+00 : f32
    %7 = vector.broadcast %cst_5 : f32 to vector<2x128xf32>
    %8 = arith.maximumf %6, %7 : vector<2x128xf32>
    %9 = arith.truncf %8 : vector<2x128xf32> to vector<2x128xbf16>
    %c0_6 = arith.constant 0 : index
    %c0_7 = arith.constant 0 : index
    %10 = vector.load %arg4[%c0_6, %c0_7] : memref<128x4xbf16, #tpu.memory_space<vmem>>, vector<128x4xbf16>
    %cst_8 = arith.constant dense<0.000000e+00> : vector<2x4xf32>
    %11 = tpu.matmul %9, %10, %cst_8 {dimension_numbers = #tpu.dot_dimension_numbers<[1], [0], [0], [1], [0, 0, 1, 1], [], []>} : vector<2x128xbf16>, vector<128x4xbf16>, vector<2x4xf32> -> vector<2x4xf32>
    %c0_9 = arith.constant 0 : index
    %c0_10 = arith.constant 0 : index
    %12 = vector.load %arg5[%c0_9, %c0_10] : memref<1x4xf32, #tpu.memory_space<vmem>>, vector<1x4xf32>
    %13 = vector.broadcast %12 : vector<1x4xf32> to vector<2x4xf32>
    %14 = arith.addf %11, %13 : vector<2x4xf32>
    %cst_11 = arith.constant dense<0xFF800000> : vector<2xf32>
    %15 = vector.multi_reduction <maximumf>, %14, %cst_11 [1] : vector<2x4xf32> to vector<2xf32>
    %16 = vector.shape_cast %15 : vector<2xf32> to vector<2x1xf32>
    %17 = vector.broadcast %16 : vector<2x1xf32> to vector<2x4xf32>
    %18 = arith.subf %14, %17 : vector<2x4xf32>
    %19 = math.exp %18 : vector<2x4xf32>
    %cst_12 = arith.constant dense<0.000000e+00> : vector<2xf32>
    %20 = vector.multi_reduction <add>, %19, %cst_12 [1] : vector<2x4xf32> to vector<2xf32>
    %21 = vector.shape_cast %20 : vector<2xf32> to vector<2x1xf32>
    %22 = vector.broadcast %21 : vector<2x1xf32> to vector<2x4xf32>
    %23 = arith.divf %19, %22 : vector<2x4xf32>
    %c0_13 = arith.constant 0 : index
    %c0_14 = arith.constant 0 : index
    %24 = vector.load %arg6[%c0_13, %c0_14] : memref<2x4xf32, #tpu.memory_space<vmem>>, vector<2x4xf32>
    tpu.vector_store %arg6[%c0_13, %c0_14], %23 {strides = array<i32>} : memref<2x4xf32, #tpu.memory_space<vmem>>, vector<2x4xf32>,
    return
  }
  func.func @transform_0(%arg0: i32) -> (i32, i32) {
    %c0_i32 = arith.constant 0 : i32
    %c0_i32_0 = arith.constant 0 : i32
    return %arg0, %c0_i32 : i32, i32
  }
  func.func @transform_1(%arg0: i32) -> (i32, i32) {
    %c0_i32 = arith.constant 0 : i32
    %c0_i32_0 = arith.constant 0 : i32
    %c0_i32_1 = arith.constant 0 : i32
    return %c0_i32, %c0_i32_0 : i32, i32
  }
  func.func @transform_2(%arg0: i32) -> (i32, i32) {
    %c0_i32 = arith.constant 0 : i32
    %c0_i32_0 = arith.constant 0 : i32
    %c0_i32_1 = arith.constant 0 : i32
    return %c0_i32, %c0_i32_0 : i32, i32
  }
  func.func @transform_3(%arg0: i32) -> (i32, i32) {
    %c0_i32 = arith.constant 0 : i32
    %c0_i32_0 = arith.constant 0 : i32
    %c0_i32_1 = arith.constant 0 : i32
    return %c0_i32, %c0_i32_0 : i32, i32
  }
  func.func @transform_4(%arg0: i32) -> (i32, i32) {
    %c0_i32 = arith.constant 0 : i32
    %c0_i32_0 = arith.constant 0 : i32
    %c0_i32_1 = arith.constant 0 : i32
    return %c0_i32, %c0_i32_0 : i32, i32
  }
  func.func @transform_5(%arg0: i32) -> (i32, i32) {
    %c0_i32 = arith.constant 0 : i32
    %c0_i32_0 = arith.constant 0 : i32
    return %arg0, %c0_i32 : i32, i32
  }
}

</mosaic_0001>

<bundles_post_ra>
// kernel: policy_net_forward.1
= control target key start
LH: loop header
LB: loop body
LE: loop exit
PB: predicated region body
PF: predicated region fallthrough
CT: control target
= control target key end

     0   :  { %vm36_vm0 = vcmask 1041408   ;;  %vm32_vm1 = vcmask 31744   ;;  %v307_v1 = vmov 0.0   ;;  %vm308_vm2 = vmmov 0   ;;  %s391_s0 = inlined_call_operand.vmem [shape: f32[2,4], index: 0, kind: input, shape index: {}]   ;;  %s392_s1 = inlined_call_operand.vmem [shape: bf16[4,128], index: 1, kind: input, shape index: {}]   ;;  %s393_s2 = inlined_call_operand.vmem [shape: f32[1,128], index: 2, kind: input, shape index: {}]   ;;  %s394_s3 = inlined_call_operand.vmem [shape: bf16[128,4], index: 3, kind: input, shape index: {}]   ;;  %s395_s4 = inlined_call_operand.vmem [shape: f32[1,4], index: 4, kind: input, shape index: {}]   ;;  %s396_s5 = inlined_call_operand.hbm [shape: f32[2,4], index: 5, kind: output, shape index: {}]  }
   0x1   :  { %v24_v0 = vld [vmem:[%s392_s1] sm:$0x3]  ;;  %242 = vmatprep.subr.bf16.mxu0 %v307_v1  ;;  %244 = vmatprep.mubr.msk.bf16.mxu0 %vm308_vm2, %v307_v1  ;;  %v272_v6 = vld [vmem:[%s394_s3 + $0x8] sm:$0xff]   ;;  %v273_v7 = vld [vmem:[%s394_s3 + $0x10] sm:$0xff]  }
   0x2   :  { %v38_v2 = vsel %vm36_vm0, %v24_v0, 0  ;;  %v22_v3 = vld [vmem:[%s391_s0] sm:$0x3]  ;;  %248 = vmatprep.subr.bf16.mxu1 %v307_v1  ;;  %264 = vmatprep.mubr.msk.bf16.mxu1 %vm308_vm2, %v307_v1 }
   0x3   :  { %v271_v4 = vld [vmem:[%s394_s3] sm:$0xff]   ;;  %243 = vmatpush3.bf16.msra.mxu0 %v38_v2  ;;  %v23_v5 = vpack.c.bf16 %v22_v3, %v22_v3 }
   0x4   :  { %249 = vmatpush3.bf16.msra.mxu1 %v271_v4 }
   0x5   :  { %250 = vmatprep.subr.bf16.mxu1 %v307_v1 }
   0x6   :  { %245 = vmatmul.mubr.msk.bf16.vlgmr.msra.gmra.mrb[0].mxu0 %vm32_vm1, %v23_v5 }
   0x8   :  { %251 = vmatpush3.bf16.msra.mxu1 %v272_v6 }
   0x9   :  { %252 = vmatprep.subr.bf16.mxu1 %v307_v1 }
   0xa   :  { %10 = vsyncpa [#allocation3], 0  ;;  %v274_v8 = vld [vmem:[%s394_s3 + $0x18] sm:$0xff]   ;;  %v275_v9 = vld [vmem:[%s394_s3 + $0x20] sm:$0xff]   ;;  %vm193_vm3 = vcmask 25600  }
   0xb   :  { %v276_v10 = vld [vmem:[%s394_s3 + $0x28] sm:$0xff]   ;;  %v277_v11 = vld [vmem:[%s394_s3 + $0x30] sm:$0xff]   ;;  %v278_v12 = vld [vmem:[%s394_s3 + $0x38] sm:$0xff]  }
   0xc   :  { %253 = vmatpush3.bf16.msra.mxu1 %v273_v7  ;;  %v220_v13 = vld [vmem:[%s393_s2] ss:$0 sm:$0xff]  ;;  %s309_s2 = smov [#allocation2]  }
   0xd   :  { %254 = vmatprep.subr.bf16.mxu1 %v307_v1  ;;  %v222_v21 = vld [vmem:[%s395_s4] ss:$0 sm:$0xff]  ;;  %s212_s3 = sshll.u32 %s309_s2, 4  ;;  %s213_s3 = int_to_ptr.vmem [resolvable:$true] %s212_s3 }
   0xe   :  { %s283_s4 = scalar_lea.vmem %s213_s3, 32  ;;  %p288_p1 = scmp.lt.s32.totalorder %s213_s3, %s213_s3 }
   0xf   :  { %p284_p0 = scmp.ne.s32.totalorder %s213_s3, %s283_s4  ;;  %p289_p2 = scmp.lt.s32.totalorder %s283_s4, %s283_s4 }
  0x10   :  { %255 = vmatpush3.bf16.msra.mxu1 %v274_v8 }
  0x11   :  { %256 = vmatprep.subr.bf16.mxu1 %v307_v1  ;;  %p290_p3 = por %p289_p2, %p288_p1 }
  0x13   :  { %p291_p4 = pnand %p290_p3, %p284_p0 }
  0x14   :  { %257 = vmatpush3.bf16.msra.mxu1 %v275_v9 }
  0x15   :  { %258 = vmatprep.subr.bf16.mxu1 %v307_v1 }
  0x18   :  { %259 = vmatpush3.bf16.msra.mxu1 %v276_v10 }
  0x19   :  { %260 = vmatprep.subr.bf16.mxu1 %v307_v1 }
  0x1c   :  { %261 = vmatpush3.bf16.msra.mxu1 %v277_v11 }
  0x1d   :  { %262 = vmatprep.subr.bf16.mxu1 %v307_v1 }
  0x20   :  { %263 = vmatpush3.bf16.msra.mxu1 %v278_v12 }
  0xd9   :  { %v74_v14 = vpop.f32.mrb[0].mxu0 }
  0xda   :  { %v75_v15 = vadd.f32 %v220_v13, %v74_v14  ;;  %v246_v16 = vpop.f32.mrb[1].mxu0 }
  0xdb   :  { %v77_v17 = vpop.f32.mrb[2].mxu0 }
  0xdc   :  { %v80_v18 = vmax.f32 %v75_v15, 0.0  ;;  %v247_v19 = vpop.f32.mrb[3].mxu0 }
  0xde   :  { %v81_v20 = vpack.c.bf16 %v80_v18, %v80_v18 }
  0xe0   :  { %265 = vmatmul.mubr.bf16.vlgmr.msra.gmra.mrb[0].mxu1 %v81_v20 }
 0x1b3   :  { %v187_v22 = vpop.f32.mrb[0].mxu1 }
 0x1b4   :  { %v188_v23 = vadd.f32 %v222_v21, %v187_v22  ;;  %v266_v24 = vpop.f32.mrb[1].mxu1 }
 0x1b5   :  { %v190_v25 = vpop.f32.mrb[2].mxu1 }
 0x1b6   :  { %v267_v26 = vpop.f32.mrb[3].mxu1  ;;  %v194_v27 = vsel %vm193_vm3, %v188_v23, -inf }
 0x1b7   :  { %195 = vmax.xlane.f32.xlu0 %v194_v27 }
 0x244   :  { %v196_v28 = vpop.xlane.xlu0 %195 }
 0x245   :  { %v197_v29 = vsub.f32 %v188_v23, %v196_v28 }
 0x247   :  { %v198_v30 = vmul.f32 1.442695, %v197_v29 }
 0x249   :  { %279 = vpow2.f32 %v198_v30 }
 0x253   :  { %v280_v31 = vpop.eup %279 }
 0x254   :  { %v200_v32 = vsel %vm193_vm3, %v280_v31, 0.0 }
 0x255   :  { %201 = vadd.xlane.f32.xlu0 %v200_v32 }
 0x2e2   :  { %v202_v33 = vpop.xlane.xlu0 %201 }
 0x2e3   :  { %281 = vrcp.f32 %v202_v33 }
 0x2ed   :  { %v282_v34 = vpop.eup %281 }
 0x2ee   :  { %v204_v35 = vmul.f32 %v282_v34, %v280_v31 }
 0x2f0   :  { %205 = vst.msk [vmem:[#allocation2] sm:$0x3] %vm193_vm3, %v204_v35 }
 0x2f1   :  { %294 = shalt.err (!%p291_p4)
}
 0x2f2   :  { %s295_s17 = scalar_lea.hbm %s396_s5, 32 }
 0x2f3   :  { %p296_p5 = scmp.ne.s32.totalorder %s396_s5, %s295_s17  ;;  %p299_p6 = scmp.lt.u32.totalorder %s295_s17, %s396_s5 }
 0x2f5   :  { %p301_p7 = pnand %p299_p6, %p296_p5 }
 0x2f7   :  { %304 = shalt.err (!%p301_p7)
}
 0x2f8   :  { %215 = dma.vmem_to_hbm [thread:$0]  %s213_s3, 32, %s396_s5, [#allocation3]  }
 0x2f9   :  { %305 = dma.done.wait [#allocation3], 32  }
 0x2fa   :  { %306 = vsyncadd [#allocation3], 4294967264 }
 0x2fb   :  { %219 = vsyncpa [#allocation3], 1 }

</bundles_post_ra>
